<compile_context>
chip_gen: v7x
topology: tpu7x:2x2x1
jax: 0.10.0
libtpu: 0.0.40
codegen_flags: <defaults>
</compile_context>

<pallas_src>
import math
import functools

import jax
import jax.numpy as jnp
from jax import lax
from jax.experimental import pallas as pl
from jax.experimental.pallas import tpu as pltpu

EPS = 1e-6
SOFTCAP = 50.0                  # attn_softclamp in QuantMixtureAttention2
_AMAX_FLOOR = 1e-8              # avoid scale=0 -> NaN on all-zero rows


def _tpu_generation():
    try:
        kind = jax.devices()[0].device_kind.lower()
    except Exception:
        return 0
    for g in (7, 6, 5):
        if ("v%d" % g) in kind:
            return g
    return 0


_GEN = _tpu_generation()
# 128-MiB parts (v5e/v5p/v6e): raise scoped VMEM; v7x (64 MiB) / unknown: keep
# the compiler default.
_VMEM_LIMIT = 96 * 1024 * 1024 if _GEN in (5, 6) else None

_TOKEN_TILES = (1024, 512, 256, 128, 64, 32, 16, 8)
_GEMM_N_TILES = (512, 256, 128, 64, 32, 16, 8)
if _GEN in (5, 6):
    _K_TILES = (2048, 1024, 512, 256, 128)
    _M_TILES = (1024, 512, 256, 128)
else:
    _K_TILES = (1024, 512, 256, 128)
    _M_TILES = (512, 256, 128)


def _pick_tile(dim, candidates):
    """Largest candidate tile that evenly divides `dim`; else the full dim."""
    for c in candidates:
        if c <= dim and dim % c == 0:
            return c
    return dim


def _compiler_params(dims):
    kw = dict(dimension_semantics=dims)
    if _VMEM_LIMIT is not None:
        kw["vmem_limit_bytes"] = _VMEM_LIMIT
    return pltpu.CompilerParams(**kw)


# ---------------------------------------------------------------------------
# Pallas kernels
# ---------------------------------------------------------------------------
def _rmsnorm_quant_kernel(x_ref, w_ref, q_ref, s_ref, *, eps):
    # RMSNormGeneral with per-token dynamic int8 quantization.
    # (Gemma's (1+w) convention is folded into the stored weight by the caller,
    #  exactly like the original QuantMixtureEncoderLayer does.)
    x = x_ref[...].astype(jnp.float32)                        # [tn, D]
    var = jnp.mean(x * x, axis=-1, keepdims=True)
    normed = x * lax.rsqrt(var + eps) * w_ref[...]            # w: [1, D]
    amax = jnp.maximum(jnp.max(jnp.abs(normed), axis=-1, keepdims=True), _AMAX_FLOOR)
    q_ref[...] = jnp.clip(jnp.round(normed * (127.0 / amax)),
                          -127.0, 127.0).astype(jnp.int8)
    s_ref[...] = amax * (1.0 / 127.0)


def _quant_kernel(x_ref, q_ref, s_ref):
    # awq_inference_engine.invoke_quant: per-token dynamic int8 quantization.
    x = x_ref[...].astype(jnp.float32)
    amax = jnp.maximum(jnp.max(jnp.abs(x), axis=-1, keepdims=True), _AMAX_FLOOR)
    q_ref[...] = jnp.clip(jnp.round(x * (127.0 / amax)),
                          -127.0, 127.0).astype(jnp.int8)
    s_ref[...] = amax * (1.0 / 127.0)


def _gelu_mul_quant_kernel(gate_ref, up_ref, q_ref, s_ref):
    # awq_inference_engine.gelu_and_mul_quant (gelu_pytorch_tanh, Gemma-style).
    gate = gate_ref[...].astype(jnp.float32)
    up = up_ref[...].astype(jnp.float32)
    c = math.sqrt(2.0 / math.pi)
    act = 0.5 * gate * (1.0 + jnp.tanh(c * (gate + 0.044715 * gate * gate * gate))) * up
    amax = jnp.maximum(jnp.max(jnp.abs(act), axis=-1, keepdims=True), _AMAX_FLOOR)
    q_ref[...] = jnp.clip(jnp.round(act * (127.0 / amax)),
                          -127.0, 127.0).astype(jnp.int8)
    s_ref[...] = amax * (1.0 / 127.0)


def _w8a8_gemm_body(qa_ref, as_ref, qw_ref, ws_ref, res_ref, o_ref, acc_ref):
    # W8A8OF16LinearDynamicInputScale: (q_act @ q_W^T) * act_scale * w_scale (+ res).
    # Operands stream as int8 (half the HBM/VMEM bytes), upcast to bf16 just
    # before the MXU, f32 accumulation in VMEM scratch.
    kk = pl.program_id(2)

    @pl.when(kk == 0)
    def _():
        acc_ref[...] = jnp.zeros_like(acc_ref)

    a = qa_ref[...].astype(jnp.float32).astype(jnp.bfloat16)  # exact for |v|<=127
    w = qw_ref[...].astype(jnp.float32).astype(jnp.bfloat16)
    acc_ref[...] += jnp.dot(a, w, preferred_element_type=jnp.float32)

    @pl.when(kk == pl.num_programs(2) - 1)
    def _():
        out = acc_ref[...] * as_ref[...] * ws_ref[...]
        if res_ref is not None:
            out = out + res_ref[...]                          # fused residual epilogue
        o_ref[...] = out.astype(o_ref.dtype)


def _w8a8_gemm_kernel(qa_ref, as_ref, qw_ref, ws_ref, o_ref, acc_ref):
    _w8a8_gemm_body(qa_ref, as_ref, qw_ref, ws_ref, None, o_ref, acc_ref)


def _w8a8_gemm_res_kernel(qa_ref, as_ref, qw_ref, ws_ref, res_ref, o_ref, acc_ref):
    _w8a8_gemm_body(qa_ref, as_ref, qw_ref, ws_ref, res_ref, o_ref, acc_ref)


def _attn_kernel(q_ref, kn_ref, vn_ref, kv_ref, vv_ref, kp_ref, vp_ref,
                 cos_ref, sin_ref, bv_ref, bp_ref, bn_ref, o_ref,
                 *, scale, softcap, group, hd):
    # Soft-capped, non-causal GQA attention for one (batch, kv-head) group.
    # RoPE is applied in-kernel to the new-chunk Q and K; the vlm / proprio
    # KV-cache segments enter pre-rotated.  Segments are kept separate (fused
    # "concat"): softmax statistics are combined across the three score blocks.
    # q_ref: [SQ, 1, group, HD]   (token-major slice of the qkv GEMM output)
    # kn/vn: [SQ, 1, 1, HD]       (new chunk K / V for this kv head)
    # kv/vv: [Lv, HD], kp/vp: [Lp, HD]   (bf16 cache segments)
    # bias refs: [1, Lv] / [1, Lp] / [1, SQ]
    # TODO(synk): original writes -inf into masked K rows before flash_attn
    # (ill-defined post-softcap); here masked keys get ~zero attention weight
    # via an additive mask applied after the softcap.
    cos = cos_ref[...]                                        # [SQ, HD] f32
    sin = sin_ref[...]
    d2 = hd // 2

    def rope(x):                                              # x: [SQ, HD] f32
        rot = jnp.concatenate([-x[:, d2:], x[:, :d2]], axis=-1)
        return x * cos + rot * sin

    k_new = rope(kn_ref[:, 0, 0, :].astype(jnp.float32)).astype(jnp.bfloat16)
    v_new = vn_ref[:, 0, 0, :]
    k_vlm, v_vlm = kv_ref[...], vv_ref[...]
    k_pro, v_pro = kp_ref[...], vp_ref[...]
    b_vlm, b_pro, b_new = bv_ref[...], bp_ref[...], bn_ref[...]

    dn = (((1,), (1,)), ((), ()))                             # contract HD, no transpose
    inv_cap = scale / softcap

    def seg_scores(qj, k_seg, b_seg):
        s = lax.dot_general(qj, k_seg, dn, preferred_element_type=jnp.float32)
        return softcap * jnp.tanh(s * inv_cap) + b_seg

    for j in range(group):                                    # static unroll over heads
        qj = rope(q_ref[:, 0, j, :].astype(jnp.float32)).astype(jnp.bfloat16)
        s1 = seg_scores(qj, k_vlm, b_vlm)
        s2 = seg_scores(qj, k_pro, b_pro)
        s3 = seg_scores(qj, k_new, b_new)
        m = jnp.maximum(jnp.maximum(jnp.max(s1, axis=-1, keepdims=True),
                                    jnp.max(s2, axis=-1, keepdims=True)),
                        jnp.max(s3, axis=-1, keepdims=True))
        p1 = jnp.exp(s1 - m)
        p2 = jnp.exp(s2 - m)
        p3 = jnp.exp(s3 - m)
        denom = (jnp.sum(p1, axis=-1, keepdims=True)
                 + jnp.sum(p2, axis=-1, keepdims=True)
                 + jnp.sum(p3, axis=-1, keepdims=True))
        o = (jnp.dot(p1.astype(jnp.bfloat16), v_vlm, preferred_element_type=jnp.float32)
             + jnp.dot(p2.astype(jnp.bfloat16), v_pro, preferred_element_type=jnp.float32)
             + jnp.dot(p3.astype(jnp.bfloat16), v_new, preferred_element_type=jnp.float32))
        o_ref[:, 0, j, :] = (o * pl.reciprocal(denom, approx=True)).astype(o_ref.dtype)


# ---------------------------------------------------------------------------
# pallas_call wrappers
# ---------------------------------------------------------------------------
def rmsnorm_quant(x, w, eps=EPS):
    n, d = x.shape
    tn = _pick_tile(n, _TOKEN_TILES)
    return pl.pallas_call(
        functools.partial(_rmsnorm_quant_kernel, eps=eps),
        out_shape=(jax.ShapeDtypeStruct((n, d), jnp.int8),
                   jax.ShapeDtypeStruct((n, 1), jnp.float32)),
        grid=(n // tn,),
        in_specs=[pl.BlockSpec((tn, d), lambda i: (i, 0)),
                  pl.BlockSpec((1, d), lambda i: (0, 0))],
        out_specs=(pl.BlockSpec((tn, d), lambda i: (i, 0)),
                   pl.BlockSpec((tn, 1), lambda i: (i, 0))),
        compiler_params=_compiler_params(("parallel",)),
    )(x, w.reshape(1, d))


def per_token_quant(x):
    n, d = x.shape
    tn = _pick_tile(n, _TOKEN_TILES)
    return pl.pallas_call(
        _quant_kernel,
        out_shape=(jax.ShapeDtypeStruct((n, d), jnp.int8),
                   jax.ShapeDtypeStruct((n, 1), jnp.float32)),
        grid=(n // tn,),
        in_specs=[pl.BlockSpec((tn, d), lambda i: (i, 0))],
        out_specs=(pl.BlockSpec((tn, d), lambda i: (i, 0)),
                   pl.BlockSpec((tn, 1), lambda i: (i, 0))),
        compiler_params=_compiler_params(("parallel",)),
    )(x)


def gelu_mul_quant(gateup, inter):
    # gateup: [N, 2*inter] bf16 = [gate | up]; halves selected via BlockSpec
    # block indices on the same array (no in-kernel lane slicing).
    n, two_i = gateup.shape
    assert two_i == 2 * inter
    tn = _pick_tile(n, _TOKEN_TILES)
    return pl.pallas_call(
        _gelu_mul_quant_kernel,
        out_shape=(jax.ShapeDtypeStruct((n, inter), jnp.int8),
                   jax.ShapeDtypeStruct((n, 1), jnp.float32)),
        grid=(n // tn,),
        in_specs=[pl.BlockSpec((tn, inter), lambda i: (i, 0)),   # gate half
                  pl.BlockSpec((tn, inter), lambda i: (i, 1))],  # up half
        out_specs=(pl.BlockSpec((tn, inter), lambda i: (i, 0)),
                   pl.BlockSpec((tn, 1), lambda i: (i, 0))),
        compiler_params=_compiler_params(("parallel",)),
    )(gateup, gateup)


def w8a8_linear(qact, act_scale, qw_t, w_scale, residual=None,
                out_dtype=jnp.float32):
    # qact: [N, K] int8, act_scale: [N, 1] f32,
    # qw_t: [K, M] int8 (pre-transposed), w_scale: [1, M] f32,
    # residual: optional [N, M] f32 fused into the epilogue.
    n, k = qact.shape
    m = qw_t.shape[1]
    tn = _pick_tile(n, _GEMM_N_TILES)
    tm = _pick_tile(m, _M_TILES)
    tk = _pick_tile(k, _K_TILES)
    grid = (n // tn, m // tm, k // tk)

    in_specs = [
        pl.BlockSpec((tn, tk), lambda i, j, kk: (i, kk)),
        pl.BlockSpec((tn, 1), lambda i, j, kk: (i, 0)),
        pl.BlockSpec((tk, tm), lambda i, j, kk: (kk, j)),
        pl.BlockSpec((1, tm), lambda i, j, kk: (0, j)),
    ]
    args = [qact, act_scale, qw_t, w_scale]
    if residual is not None:
        in_specs.append(pl.BlockSpec((tn, tm), lambda i, j, kk: (i, j)))
        args.append(residual)
        kernel = _w8a8_gemm_res_kernel
    else:
        kernel = _w8a8_gemm_kernel

    out_bytes = jnp.dtype(out_dtype).itemsize
    bytes_accessed = n * k + k * m + 4 * n + 4 * m + n * m * out_bytes
    if residual is not None:
        bytes_accessed += n * m * residual.dtype.itemsize
    cost = pl.CostEstimate(flops=2 * n * m * k, transcendentals=0,
                           bytes_accessed=int(bytes_accessed))

    return pl.pallas_call(
        kernel,
        out_shape=jax.ShapeDtypeStruct((n, m), out_dtype),
        grid=grid,
        in_specs=in_specs,
        out_specs=pl.BlockSpec((tn, tm), lambda i, j, kk: (i, j)),
        scratch_shapes=[pltpu.VMEM((tn, tm), jnp.float32)],
        compiler_params=_compiler_params(("parallel", "parallel", "arbitrary")),
        cost_estimate=cost,
    )(*args)


def attention(q5, k5, v5, k_vlm, v_vlm, k_prop, v_prop, cos, sin,
              bias_vlm, bias_prop, bias_new, softcap=SOFTCAP):
    # q5: [B, SQ, NKV, group, HD] bf16 (token-major, pre-RoPE)
    # k5/v5: [B, SQ, NKV, 1, HD] bf16 (new chunk, pre-RoPE K)
    # caches: [B, NKV, L, HD] bf16 ; cos/sin: [SQ, HD] f32 ; biases: [1, L] f32
    # Output is token-major [B, SQ, NKV, group, HD] (row-major == [B*SQ, NH*HD]).
    b, sq, nkv, group, hd = q5.shape
    lv = k_vlm.shape[2]
    lp = k_prop.shape[2]
    skv = lv + lp + sq
    nh = nkv * group
    scale = 1.0 / math.sqrt(hd)

    in_bytes = 2 * (q5.size + k5.size + v5.size + k_vlm.size + v_vlm.size
                    + k_prop.size + v_prop.size) + 4 * (cos.size + sin.size + skv)
    cost = pl.CostEstimate(flops=4 * b * nh * sq * skv * hd,
                           transcendentals=2 * b * nh * sq * skv,
                           bytes_accessed=int(in_bytes + 2 * q5.size))

    return pl.pallas_call(
        functools.partial(_attn_kernel, scale=scale, softcap=softcap,
                          group=group, hd=hd),
        out_shape=jax.ShapeDtypeStruct((b, sq, nkv, group, hd), jnp.bfloat16),
        grid=(b, nkv),
        in_specs=[
            pl.BlockSpec((None, sq, 1, group, hd), lambda bi, gi: (bi, 0, gi, 0, 0)),
            pl.BlockSpec((None, sq, 1, 1, hd), lambda bi, gi: (bi, 0, gi, 0, 0)),
            pl.BlockSpec((None, sq, 1, 1, hd), lambda bi, gi: (bi, 0, gi, 0, 0)),
            pl.BlockSpec((None, None, lv, hd), lambda bi, gi: (bi, gi, 0, 0)),
            pl.BlockSpec((None, None, lv, hd), lambda bi, gi: (bi, gi, 0, 0)),
            pl.BlockSpec((None, None, lp, hd), lambda bi, gi: (bi, gi, 0, 0)),
            pl.BlockSpec((None, None, lp, hd), lambda bi, gi: (bi, gi, 0, 0)),
            pl.BlockSpec((sq, hd), lambda bi, gi: (0, 0)),
            pl.BlockSpec((sq, hd), lambda bi, gi: (0, 0)),
            pl.BlockSpec((1, lv), lambda bi, gi: (0, 0)),
            pl.BlockSpec((1, lp), lambda bi, gi: (0, 0)),
            pl.BlockSpec((1, sq), lambda bi, gi: (0, 0)),
        ],
        out_specs=pl.BlockSpec((None, sq, 1, group, hd),
                               lambda bi, gi: (bi, 0, gi, 0, 0)),
        compiler_params=_compiler_params(("parallel", "parallel")),
        cost_estimate=cost,
    )(q5, k5, v5, k_vlm, v_vlm, k_prop, v_prop, cos, sin,
      bias_vlm, bias_prop, bias_new)


# ---------------------------------------------------------------------------
# JAX glue: freqs, layer stack, final norm
# ---------------------------------------------------------------------------
def precompute_freqs(dim, end, theta=10000.0):
    inv_freq = 1.0 / theta ** (jnp.arange(0, dim, 2, dtype=jnp.float32) / dim)
    seq = jnp.arange(end, dtype=jnp.float32)
    freqs = jnp.einsum("i,j->ij", seq, inv_freq)
    return jnp.concatenate([freqs, freqs], axis=-1)          # [end, dim]


def encoder_layer(hidden, lp_, cos, sin, bias_full, kv_vlm, kv_prop,
                  bsz, seqlen, cfg):
    d, nh, hd, nkv = cfg["d"], cfg["nh"], cfg["hd"], cfg["nkv"]
    q_dim, kv_dim = nh * hd, nkv * hd
    group = nh // nkv
    x = hidden.reshape(-1, d)

    # --- attention block ---
    residual = x
    qx, sx = rmsnorm_quant(x, lp_["ln1_w"])
    qkv = w8a8_linear(qx, sx, lp_["qkv_qw_t"], lp_["qkv_ws"], out_dtype=jnp.bfloat16)
    # Row-major reshapes only (no transposes); RoPE + KV-cache concat are fused
    # into the attention kernel.
    q5 = qkv[:, :q_dim].reshape(bsz, seqlen, nkv, group, hd)
    k5 = qkv[:, q_dim:q_dim + kv_dim].reshape(bsz, seqlen, nkv, 1, hd)
    v5 = qkv[:, q_dim + kv_dim:].reshape(bsz, seqlen, nkv, 1, hd)

    k_vlm = kv_vlm[0].astype(jnp.bfloat16)
    v_vlm = kv_vlm[1].astype(jnp.bfloat16)
    k_prop = kv_prop[0].astype(jnp.bfloat16)
    v_prop = kv_prop[1].astype(jnp.bfloat16)
    lv, lpn = k_vlm.shape[2], k_prop.shape[2]
    bias_vlm = bias_full[:, :lv]
    bias_prop = bias_full[:, lv:lv + lpn]
    bias_new = bias_full[:, lv + lpn:]

    attn = attention(q5, k5, v5, k_vlm, v_vlm, k_prop, v_prop,
                     cos, sin, bias_vlm, bias_prop, bias_new)
    attn = attn.reshape(bsz * seqlen, q_dim)                  # free (token-major layout)
    qa, sa = per_token_quant(attn)
    x = w8a8_linear(qa, sa, lp_["o_qw_t"], lp_["o_ws"], residual=residual)

    # --- MLP block ---
    residual = x
    qn, sn = rmsnorm_quant(x, lp_["ln2_w"])
    gu = w8a8_linear(qn, sn, lp_["gu_qw_t"], lp_["gu_ws"], out_dtype=jnp.bfloat16)
    qm, sm = gelu_mul_quant(gu, cfg["inter"])
    x = w8a8_linear(qm, sm, lp_["down_qw_t"], lp_["down_ws"], residual=residual)
    return x.reshape(bsz, seqlen, d)


def quant_mixture_forward(attention_mask, position_ids_action, embeds_action,
                          params, kv_caches, cfg):
    bsz, seqlen, d = embeds_action.shape
    # freqs slice as in QuantMixture.forward: self.freqs[start:end] — jit-safe.
    # TODO(synk): assumes end - start == seqlen (true for the original usage).
    start = position_ids_action[0, 0]
    freqs = lax.dynamic_slice_in_dim(params["freqs"], start, seqlen, axis=0)
    cos = jnp.cos(freqs)                                      # [S, HD]
    sin = jnp.sin(freqs)
    # Same batch-0 / row-0 mask sharing as the original flash_attention helper.
    mask_bool = attention_mask[0, 0, 0] == -65504.0
    bias_full = jnp.where(mask_bool, -1e30, 0.0).astype(jnp.float32)[None, :]

    hidden = embeds_action
    for i, lp_ in enumerate(params["layers"]):
        hidden = encoder_layer(hidden, lp_, cos, sin, bias_full,
                               kv_caches["vlm"][i], kv_caches["proprio"][i],
                               bsz, seqlen, cfg)

    # final module.norm: RMSNorm (plain JAX glue, runs once)
    x = hidden
    var = jnp.mean(x * x, axis=-1, keepdims=True)
    out = x * lax.rsqrt(var + EPS) * params["norm_w"]
    return {"action": out}


# ---------------------------------------------------------------------------
# Deterministic synthetic parameters / inputs
# ---------------------------------------------------------------------------
def quantize_weight(w):
    # per-output-channel symmetric int8 quant (W8A8OF16LinearDynamicInputScale);
    # quantized integers stored as native int8, weight pre-transposed to [K, M].
    amax = jnp.maximum(jnp.max(jnp.abs(w), axis=1, keepdims=True), _AMAX_FLOOR)
    scale = amax / 127.0
    q = jnp.clip(jnp.round(w / scale), -127.0, 127.0)
    return q.T.astype(jnp.int8), scale.reshape(1, -1).astype(jnp.float32)


def make_params(key, cfg, n_layers):
    d, nh, hd, nkv, inter = cfg["d"], cfg["nh"], cfg["hd"], cfg["nkv"], cfg["inter"]
    q_dim, kv_dim = nh * hd, nkv * hd
    layers = []
    for _ in range(n_layers):
        key, *ks = jax.random.split(key, 7)
        qkv_w = jax.random.normal(ks[0], (q_dim + 2 * kv_dim, d), jnp.float32) * 0.02
        o_w = jax.random.normal(ks[1], (d, q_dim), jnp.float32) * 0.02
        gu_w = jax.random.normal(ks[2], (2 * inter, d), jnp.float32) * 0.02
        dn_w = jax.random.normal(ks[3], (d, inter), jnp.float32) * 0.02
        qkv_qw_t, qkv_ws = quantize_weight(qkv_w)
        o_qw_t, o_ws = quantize_weight(o_w)
        gu_qw_t, gu_ws = quantize_weight(gu_w)
        dn_qw_t, dn_ws = quantize_weight(dn_w)
        layers.append(dict(
            ln1_w=1.0 + 0.1 * jax.random.normal(ks[4], (d,), jnp.float32),
            ln2_w=1.0 + 0.1 * jax.random.normal(ks[5], (d,), jnp.float32),
            qkv_qw_t=qkv_qw_t, qkv_ws=qkv_ws,
            o_qw_t=o_qw_t, o_ws=o_ws,
            gu_qw_t=gu_qw_t, gu_ws=gu_ws,
            down_qw_t=dn_qw_t, down_ws=dn_ws,
        ))
    key, knorm = jax.random.split(key)
    return dict(
        layers=layers,
        norm_w=1.0 + 0.1 * jax.random.normal(knorm, (d,), jnp.float32),
        freqs=precompute_freqs(hd, cfg["seqlen"] + 1, cfg["theta"]),
    )


if __name__ == "__main__":
    cfg = dict(d=128, nh=4, hd=32, nkv=2, inter=256,
               bsz=2, seqlen=8, theta=10000.0)
    n_layers = 2
    vlm_len, prop_len = 4, 2
    bsz, seqlen = cfg["bsz"], cfg["seqlen"]
    kv_total = vlm_len + prop_len + seqlen

    key = jax.random.PRNGKey(0)
    key, kp, ke, kc = jax.random.split(key, 4)
    params = make_params(kp, cfg, n_layers)

    embeds_action = jax.random.normal(ke, (bsz, seqlen, cfg["d"]), jnp.float32)
    # position ids chosen so freqs[start:start+seqlen] has exactly `seqlen` rows
    position_ids_action = jnp.arange(0, seqlen + 1, dtype=jnp.int32)[None, :]

    # attention mask with two masked key positions (value -65504 like fp16 -inf)
    attention_mask = jnp.zeros((bsz, 1, seqlen, kv_total), jnp.float32)
    attention_mask = attention_mask.at[:, :, :, jnp.array([1, 3])].set(-65504.0)

    # synthetic kv caches for vlm / proprio prefixes, per layer (bf16 cache)
    kv_caches = {"vlm": {}, "proprio": {}}
    for i in range(n_layers):
        kc, k1, k2, k3, k4 = jax.random.split(kc, 5)
        kv_caches["vlm"][i] = (
            jax.random.normal(k1, (bsz, cfg["nkv"], vlm_len, cfg["hd"]),
                              jnp.float32).astype(jnp.bfloat16),
            jax.random.normal(k2, (bsz, cfg["nkv"], vlm_len, cfg["hd"]),
                              jnp.float32).astype(jnp.bfloat16))
        kv_caches["proprio"][i] = (
            jax.random.normal(k3, (bsz, cfg["nkv"], prop_len, cfg["hd"]),
                              jnp.float32).astype(jnp.bfloat16),
            jax.random.normal(k4, (bsz, cfg["nkv"], prop_len, cfg["hd"]),
                              jnp.float32).astype(jnp.bfloat16))

    out = quant_mixture_forward(attention_mask, position_ids_action, embeds_action,
                                params, kv_caches, cfg)
    jax.block_until_ready(out["action"])
    assert out["action"].shape == (bsz, seqlen, cfg["d"])
    assert bool(jnp.all(jnp.isfinite(out["action"])))
    print("KERNEL_OK")
</pallas_src>

<mosaic_0001>
module attributes {stable_mosaic.version = 11 : i64} {
  func.func @_rmsnorm_quant_kernel(%arg0: i32, %arg1: memref<16x128xf32, #tpu.memory_space<vmem>>, %arg2: memref<1x128xf32, #tpu.memory_space<vmem>>, %arg3: memref<16x128xi8, #tpu.memory_space<vmem>>, %arg4: memref<16x1xf32, #tpu.memory_space<vmem>>) attributes {dimension_semantics = [#tpu.dimension_semantics<parallel>], iteration_bounds = array<i64: 1>, scalar_prefetch = 0 : i64, scratch_operands = 0 : i64, tpu.core_type = #tpu.core_type<tc>, window_params = [{transform_indices = @transform_0, window_bounds = array<i64: 16, 128>}, {pipeline_mode = #tpu.pipeline_mode<synchronous>, transform_indices = @transform_1, window_bounds = array<i64: 1, 128>}, {transform_indices = @transform_2, window_bounds = array<i64: 16, 128>}, {transform_indices = @transform_3, window_bounds = array<i64: 16, 1>}]} {
    %c0 = arith.constant 0 : index
    %c0_0 = arith.constant 0 : index
    %0 = vector.load %arg1[%c0, %c0_0] : memref<16x128xf32, #tpu.memory_space<vmem>>, vector<16x128xf32>
    %1 = arith.mulf %0, %0 : vector<16x128xf32>
    %cst = arith.constant dense<0.000000e+00> : vector<16xf32>
    %2 = vector.multi_reduction <add>, %1, %cst [1] : vector<16x128xf32> to vector<16xf32>
    %3 = vector.shape_cast %2 : vector<16xf32> to vector<16x1xf32>
    %cst_1 = arith.constant 1.280000e+02 : f32
    %4 = vector.broadcast %cst_1 : f32 to vector<16x1xf32>
    %5 = arith.divf %3, %4 : vector<16x1xf32>
    %cst_2 = arith.constant 9.99999997E-7 : f32
    %6 = vector.broadcast %cst_2 : f32 to vector<16x1xf32>
    %7 = arith.addf %5, %6 : vector<16x1xf32>
    %8 = math.rsqrt %7 : vector<16x1xf32>
    %9 = vector.broadcast %8 : vector<16x1xf32> to vector<16x128xf32>
    %10 = arith.mulf %0, %9 : vector<16x128xf32>
    %c0_3 = arith.constant 0 : index
    %c0_4 = arith.constant 0 : index
    %11 = vector.load %arg2[%c0_3, %c0_4] : memref<1x128xf32, #tpu.memory_space<vmem>>, vector<1x128xf32>
    %12 = vector.broadcast %11 : vector<1x128xf32> to vector<16x128xf32>
    %13 = arith.mulf %10, %12 : vector<16x128xf32>
    %14 = math.absf %13 : vector<16x128xf32>
    %cst_5 = arith.constant dense<0xFF800000> : vector<16xf32>
    %15 = vector.multi_reduction <maximumf>, %14, %cst_5 [1] : vector<16x128xf32> to vector<16xf32>
    %16 = vector.shape_cast %15 : vector<16xf32> to vector<16x1xf32>
    %cst_6 = arith.constant 9.99999993E-9 : f32
    %17 = vector.broadcast %cst_6 : f32 to vector<16x1xf32>
    %18 = arith.maximumf %16, %17 : vector<16x1xf32>
    %cst_7 = arith.constant 1.270000e+02 : f32
    %19 = vector.broadcast %cst_7 : f32 to vector<16x1xf32>
    %20 = arith.divf %19, %18 : vector<16x1xf32>
    %21 = vector.broadcast %20 : vector<16x1xf32> to vector<16x128xf32>
    %22 = arith.mulf %13, %21 : vector<16x128xf32>
    %23 = math.roundeven %22 : vector<16x128xf32>
    %cst_8 = arith.constant -1.270000e+02 : f32
    %cst_9 = arith.constant 1.270000e+02 : f32
    %24 = vector.broadcast %cst_8 : f32 to vector<16x128xf32>
    %25 = arith.maximumf %24, %23 : vector<16x128xf32>
    %26 = vector.broadcast %cst_9 : f32 to vector<16x128xf32>
    %27 = arith.minimumf %26, %25 : vector<16x128xf32>
    %28 = arith.fptosi %27 : vector<16x128xf32> to vector<16x128xi8>
    %c0_10 = arith.constant 0 : index
    %c0_11 = arith.constant 0 : index
    %29 = vector.load %arg3[%c0_10, %c0_11] : memref<16x128xi8, #tpu.memory_space<vmem>>, vector<16x128xi8>
    tpu.vector_store %arg3[%c0_10, %c0_11], %28 {strides = array<i32>} : memref<16x128xi8, #tpu.memory_space<vmem>>, vector<16x128xi8>,
    %cst_12 = arith.constant 0.00787401571 : f32
    %30 = vector.broadcast %cst_12 : f32 to vector<16x1xf32>
    %31 = arith.mulf %18, %30 : vector<16x1xf32>
    %c0_13 = arith.constant 0 : index
    %c0_14 = arith.constant 0 : index
    %32 = vector.load %arg4[%c0_13, %c0_14] : memref<16x1xf32, #tpu.memory_space<vmem>>, vector<16x1xf32>
    tpu.vector_store %arg4[%c0_13, %c0_14], %31 {strides = array<i32>} : memref<16x1xf32, #tpu.memory_space<vmem>>, vector<16x1xf32>,
    return
  }
  func.func @transform_0(%arg0: i32) -> (i32, i32) {
    %c0_i32 = arith.constant 0 : i32
    %c0_i32_0 = arith.constant 0 : i32
    return %arg0, %c0_i32 : i32, i32
  }
  func.func @transform_1(%arg0: i32) -> (i32, i32) {
    %c0_i32 = arith.constant 0 : i32
    %c0_i32_0 = arith.constant 0 : i32
    %c0_i32_1 = arith.constant 0 : i32
    return %c0_i32, %c0_i32_0 : i32, i32
  }
  func.func @transform_2(%arg0: i32) -> (i32, i32) {
    %c0_i32 = arith.constant 0 : i32
    %c0_i32_0 = arith.constant 0 : i32
    return %arg0, %c0_i32 : i32, i32
  }
  func.func @transform_3(%arg0: i32) -> (i32, i32) {
    %c0_i32 = arith.constant 0 : i32
    %c0_i32_0 = arith.constant 0 : i32
    return %arg0, %c0_i32 : i32, i32
  }
}

</mosaic_0001>

<bundles_post_ra>
// kernel: tpu_custom_call.1
= control target key start
LH: loop header
LB: loop body
LE: loop exit
PB: predicated region body
PF: predicated region fallthrough
CT: control target
= control target key end

     0   :  { %9 = vsyncpa [#allocation3], 0  ;;  %s242_s0 = inlined_call_operand.hbm [shape: f32[16,128], index: 0, kind: input, shape index: {}]   ;;  %s243_s1 = inlined_call_operand.vmem [shape: f32[1,128], index: 1, kind: input, shape index: {}]   ;;  %s244_s2 = inlined_call_operand.hbm [shape: s8[16,128], index: 2, kind: output, shape index: {0}]   ;;  %s245_s3 = inlined_call_operand.vmem [shape: f32[16,1], index: 3, kind: output, shape index: {1}]  }
   0x1   :  { %10 = vsyncpa [#allocation4], 0  ;;  %s183_s12 = smov [#allocation2]   ;;  %s135_s16 = scalar_lea.hbm %s242_s0, 256 }
   0x2   :  { %s16_s13 = sshll.u32 %s183_s12, 4  ;;  %p136_p0 = scmp.ne.s32.totalorder %s242_s0, %s135_s16  ;;  %s17_s13 = int_to_ptr.vmem [resolvable:$true] %s16_s13 }
   0x3   :  { %p139_p1 = scmp.lt.u32.totalorder %s135_s16, %s242_s0 }
   0x5   :  { %p141_p2 = pnand %p139_p1, %p136_p0 }
   0x7   :  { %144 = shalt.err (!%p141_p2)
}
   0x8   :  { %s145_s21 = scalar_lea.vmem %s17_s13, 256  ;;  %p150_p4 = scmp.lt.s32.totalorder %s17_s13, %s17_s13 }
   0x9   :  { %p146_p3 = scmp.ne.s32.totalorder %s17_s13, %s145_s21  ;;  %p151_p5 = scmp.lt.s32.totalorder %s145_s21, %s145_s21 }
   0xb   :  { %p152_p6 = por %p151_p5, %p150_p4 }
   0xd   :  { %p153_p7 = pnand %p152_p6, %p146_p3 }
   0xf   :  { %156 = shalt.err (!%p153_p7)
}
  0x10   :  { %s184_s22 = smov 128   ;;  %s185_s23 = smov 8  }
  0x11   :  { %22 = dma.hbm_to_vmem [thread:$0]  %s242_s0, 256, %s17_s13, [#allocation3], %s184_s22, %s184_s22, %s185_s23  }
  0x12   :  { %179 = dma.done.wait [#allocation3], 256  }
  0x13   :  { %180 = vsyncadd [#allocation3], 4294967040  ;;  %v28_v0 = vld [vmem:[#allocation2] sm:$0xff]  ;;  %v29_v1 = vld [vmem:[#allocation2 + $0x8] sm:$0xff]  ;;  %vm92_vm0 = vcmask 7168   ;;  %s186_s30 = smov [#allocation5]  }
  0x14   :  { %v30_v2 = vmul.f32 %v28_v0, %v28_v0  ;;  %v31_v3 = vmul.f32 %v29_v1, %v29_v1  ;;  %v116_v11 = vld [vmem:[%s243_s1] ss:$0 sm:$0xff]  ;;  %s100_s4 = sshll.u32 %s186_s30, 4  ;;  %s101_s4 = int_to_ptr.vmem [resolvable:$true] %s100_s4 }
  0x15   :  { %p162_p9 = scmp.lt.s32.totalorder %s101_s4, %s101_s4 }
  0x16   :  { %32 = vadd.xlane.f32.xlu0 %v30_v2 }
  0x1a   :  { %34 = vadd.xlane.f32.xlu0 %v31_v3 }
  0xa3   :  { %v33_v4 = vpop.xlane.xlu0 %32 }
  0xa4   :  { %v37_v5 = vmul.f32 0.0078125, %v33_v4 }
  0xa6   :  { %v39_v6 = vadd.f32 1e-06, %v37_v5 }
  0xa7   :  { %v35_v7 = vpop.xlane.xlu0 %34 }
  0xa8   :  { %127 = vrsqrt.f32 %v39_v6  ;;  %v38_v8 = vmul.f32 0.0078125, %v35_v7 }
  0xaa   :  { %v40_v9 = vadd.f32 1e-06, %v38_v8 }
  0xac   :  { %129 = vrsqrt.f32 %v40_v9 }
  0xb2   :  { %v128_v10 = vpop.eup %127 }
  0xb3   :  { %v43_v12 = vmul.f32 %v128_v10, %v28_v0 }
  0xb5   :  { %v52_v13 = vmul.f32 %v116_v11, %v43_v12 }
  0xb6   :  { %v130_v14 = vpop.eup %129 }
  0xb7   :  { %v54_v15 = vand.u32 2147483647, %v52_v13  ;;  %v44_v16 = vmul.f32 %v130_v14, %v29_v1 }
  0xb9   :  { %56 = vmax.xlane.f32.xlu1 %v54_v15  ;;  %v53_v17 = vmul.f32 %v116_v11, %v44_v16 }
  0xbb   :  { %v55_v18 = vand.u32 2147483647, %v53_v17 }
  0xbd   :  { %58 = vmax.xlane.f32.xlu1 %v55_v18 }
 0x146   :  { %v57_v19 = vpop.xlane.xlu1 %56 }
 0x147   :  { %v60_v20 = vmax.f32 %v57_v19, 1e-08 }
 0x149   :  { %131 = vrcp.f32 %v60_v20  ;;  %v90_v21 = vmul.f32 0.007874016, %v60_v20 }
 0x14a   :  { %v59_v22 = vpop.xlane.xlu1 %58 }
 0x14b   :  { %93 = vst.msk [vmem:[%s245_s3] sm:$0xff] %vm92_vm0, %v90_v21  ;;  %v61_v23 = vmax.f32 %v59_v22, 1e-08 }
 0x14d   :  { %133 = vrcp.f32 %v61_v23  ;;  %v91_v24 = vmul.f32 0.007874016, %v61_v23 }
 0x14f   :  { %94 = vst.msk [vmem:[%s245_s3 + $0x8] sm:$0xff] %vm92_vm0, %v91_v24  ;;  %s157_s3 = scalar_lea.vmem %s101_s4, 64 }
 0x150   :  { %p158_p8 = scmp.ne.s32.totalorder %s101_s4, %s157_s3  ;;  %p163_p10 = scmp.lt.s32.totalorder %s157_s3, %s157_s3 }
 0x152   :  { %p164_p11 = por %p163_p10, %p162_p9 }
 0x153   :  { %v132_v25 = vpop.eup %131 }
 0x154   :  { %v63_v26 = vmul.f32 127.0, %v132_v25  ;;  %p165_p12 = pnand %p164_p11, %p158_p8 }
 0x156   :  { %v66_v27 = vmul.f32 %v63_v26, %v52_v13 }
 0x157   :  { %v134_v28 = vpop.eup %133 }
 0x158   :  { %v119_v29 = vround.rtne.f32 %v66_v27  ;;  %v65_v30 = vmul.f32 127.0, %v134_v28 }
 0x15a   :  { %v67_v31 = vmul.f32 %v65_v30, %v53_v17  ;;  %v117_v32 = vclamps-f32 %v119_v29, 127.0 }
 0x15c   :  { %v120_v33 = vround.rtne.f32 %v67_v31  ;;  %v74_v35 = vtrunc.f32 %v117_v32 }
 0x15e   :  { %v118_v34 = vclamps-f32 %v120_v33, 127.0 }
 0x160   :  { %v75_v36 = vtrunc.f32 %v118_v34 }
 0x162   :  { %v76_v37 = vpack.c.f32.eXmY %v74_v35, %v75_v36, 312 }
 0x164   :  { %v80_v38 = vpack.c.b8 %v76_v37, %v76_v37 }
 0x166   :  { %v82_v39 = vunpack.c.0.s8 %v80_v38  ;;  %v83_v40 = vunpack.c.1.s8 %v80_v38 }
 0x168   :  { %v84_v41 = vpack.c.b16 %v82_v39, %v82_v39  ;;  %v86_v42 = vpack.c.b16 %v83_v40, %v83_v40 }
 0x16a   :  { %v85_v43 = vpack.c.b8 %v84_v41, %v84_v41  ;;  %v87_v44 = vpack.c.b8 %v86_v42, %v86_v42 }
 0x16c   :  { %88 = vst [vmem:[#allocation5] sm:$0x3] %v85_v43  ;;  %89 = vst [vmem:[#allocation5 + $0x2] sm:$0x3] %v87_v44 }
 0x16d   :  { %168 = shalt.err (!%p165_p12)
}
 0x16e   :  { %s169_s7 = scalar_lea.hbm %s244_s2, 64 }
 0x16f   :  { %p170_p13 = scmp.ne.s32.totalorder %s244_s2, %s169_s7  ;;  %p173_p0 = scmp.lt.u32.totalorder %s169_s7, %s244_s2 }
 0x171   :  { %p175_p1 = pnand %p173_p0, %p170_p13 }
 0x173   :  { %178 = shalt.err (!%p175_p1)
}
 0x174   :  { %s187_s12 = smov 32   ;;  %s188_s13 = smov 2  }
 0x175   :  { %106 = dma.vmem_to_hbm [thread:$0]  %s101_s4, 64, %s244_s2, [#allocation4], %s187_s12, %s187_s12, %s188_s13  }
 0x176   :  { %181 = dma.done.wait [#allocation4], 64  }
 0x177   :  { %182 = vsyncadd [#allocation4], 4294967232 }
 0x178   :  { %114 = vsyncpa [#allocation3], 1 }
 0x179   :  { %115 = vsyncpa [#allocation4], 1 }

</bundles_post_ra>
